<compile_context>
chip_gen: v5e
topology: v5e:2x2
jax: 0.10.0
libtpu: 0.0.40
codegen_flags: <defaults>
</compile_context>

<pallas_src>
import functools

import jax
import jax.numpy as jnp
from jax import lax
from jax.experimental import pallas as pl
from jax.experimental.pallas import tpu as pltpu


EMBEDDING_DIM = 16
HIDDEN_DIM = 256
NUM_HEROES = 10
OTHER_FEATURES = 166
EMB_FEATURES = NUM_HEROES * EMBEDDING_DIM            # 160
IN_FEATURES = EMB_FEATURES + OTHER_FEATURES          # 326
X_COLS = 1 + NUM_HEROES + OTHER_FEATURES             # 177 raw input columns
NUM_CLASSES = 2


def _round_up(x, m):
    return ((x + m - 1) // m) * m


def _dota_mlp_kernel(x_ref, he_ref, w1x_ref, w1e_ref, b1_ref, wd_ref, bd_ref, o_ref):
    """fc1 (split) -> ReLU -> (dropout: eval identity) -> fc2-as-logit-diff -> sigmoid."""
    # fc1 = x @ W1x + he @ W1e  (bf16 MXU operands, f32 accumulation).
    # W1x has zero rows for col 0 and the 10 hero-id columns, so feeding the raw
    # x tile is numerically identical to feeding only the 166 "other" features.
    xb = x_ref[...].astype(jnp.bfloat16)                                   # [tm, 177]
    h = jnp.dot(xb, w1x_ref[...], preferred_element_type=jnp.float32)      # [tm, 256]
    h = h + jnp.dot(he_ref[...], w1e_ref[...], preferred_element_type=jnp.float32)
    h = jnp.maximum(h + b1_ref[...], 0.0)                                  # bias + ReLU, f32
    # dropout1: eval-mode identity.
    # fc2 folded to the single logit difference d = z1 - z0;
    # softmax([z0, z1]) == [1 - sigmoid(d), sigmoid(d)].
    d = jnp.dot(h.astype(jnp.bfloat16), wd_ref[...],
                preferred_element_type=jnp.float32)                        # [tm, 1]
    d = d + bd_ref[...]
    p1 = pl.reciprocal(1.0 + jnp.exp(-d), approx=True)                     # exp + rcp on EUP
    cls = lax.broadcasted_iota(jnp.int32, o_ref.shape, 1)                  # [tm, 2]
    o_ref[...] = jnp.where(cls == 1, p1, 1.0 - p1)                         # one [tm, 2] store


def dota_nn_forward(x, params, *, tile_m=4096):
    """x: [B, 177] float32 (col 0 unused, cols 1:11 hero ids, cols 11: other feats)."""
    emb = params["embedding"]          # [vocab, 16]
    w1 = params["w1"]                  # [326, 256]
    b1 = params["b1"]                  # [1, 256]
    w2 = params["w2"]                  # [256, 2]
    b2 = params["b2"]                  # [1, 2]

    x = x.astype(jnp.float32)
    B, n_cols = x.shape
    assert n_cols == X_COLS, f"expected {X_COLS} input columns, got {n_cols}"

    # Hero-embedding gather stays in XLA (tiny 130x16 table), but only the
    # compact bf16 [B, 160] result is materialized -- never a full x_cat copy.
    heroes = x[:, 1:1 + NUM_HEROES].astype(jnp.int32)                      # [B, 10]
    he = jnp.take(emb, heroes, axis=0).reshape(B, EMB_FEATURES)            # [B, 160]
    he = he.astype(jnp.bfloat16)

    # fc1 weights, split to match the two kernel operands (bf16 MXU operands).
    #   W1e: fc1 rows for the 160 embedding features.
    #   W1x: one row per raw x column; zeros for col 0 + the 10 id columns,
    #        fc1 rows 160:326 for the 166 "other" feature columns.
    w1e = w1[:EMB_FEATURES].astype(jnp.bfloat16)                           # [160, 256]
    w1x = jnp.pad(w1[EMB_FEATURES:], ((1 + NUM_HEROES, 0), (0, 0)))        # [177, 256]
    w1x = w1x.astype(jnp.bfloat16)
    b1f = b1.reshape(1, HIDDEN_DIM).astype(jnp.float32)
    # fc2 folded into the logit-difference column (softmax(2) == sigmoid fold).
    w_diff = (w2[:, 1] - w2[:, 0]).reshape(HIDDEN_DIM, 1).astype(jnp.bfloat16)
    b_diff = (b2.reshape(-1)[1] - b2.reshape(-1)[0]).reshape(1, 1).astype(jnp.float32)

    # Batch tiling: multiple of 8; ensure >= 2 grid steps when the batch allows
    # it (so the "parallel" axis can shard across both TensorCores on v7x).
    tm_req = max(8, _round_up(int(tile_m), 8))
    b8 = _round_up(B, 8)
    if tm_req >= b8 and b8 >= 16:
        tm = _round_up((b8 + 1) // 2, 8)
    else:
        tm = min(tm_req, b8)
    grid = (pl.cdiv(B, tm),)   # ragged last block: padded reads / masked writes

    cost = pl.CostEstimate(
        flops=2 * B * HIDDEN_DIM * (n_cols + EMB_FEATURES + 1),
        transcendentals=B,
        bytes_accessed=(x.size * 4 + he.size * 2 + w1x.size * 2 + w1e.size * 2
                        + b1f.size * 4 + w_diff.size * 2 + 4
                        + B * NUM_CLASSES * 4),
    )

    out = pl.pallas_call(
        _dota_mlp_kernel,
        out_shape=jax.ShapeDtypeStruct((B, NUM_CLASSES), jnp.float32),
        grid=grid,
        in_specs=[
            pl.BlockSpec((tm, n_cols), lambda i: (i, 0)),                  # x tile (f32)
            pl.BlockSpec((tm, EMB_FEATURES), lambda i: (i, 0)),            # hero-emb tile (bf16)
            pl.BlockSpec((n_cols, HIDDEN_DIM), lambda i: (0, 0)),          # W1x: VMEM-resident
            pl.BlockSpec((EMB_FEATURES, HIDDEN_DIM), lambda i: (0, 0)),    # W1e: VMEM-resident
            pl.BlockSpec((1, HIDDEN_DIM), lambda i: (0, 0)),               # b1
            pl.BlockSpec((HIDDEN_DIM, 1), lambda i: (0, 0)),               # w_diff
            pl.BlockSpec((1, 1), lambda i: (0, 0)),                        # b_diff
        ],
        out_specs=pl.BlockSpec((tm, NUM_CLASSES), lambda i: (i, 0)),
        compiler_params=pltpu.CompilerParams(
            dimension_semantics=("parallel",),
            vmem_limit_bytes=48 * 1024 * 1024,
        ),
        cost_estimate=cost,
    )(x, he, w1x, w1e, b1f, w_diff, b_diff)
    return out


def dota_nn_reference(x, params):
    """Pure-JAX f32 reference of the PyTorch forward (eval mode)."""
    B = x.shape[0]
    heroes = x[:, 1:11].astype(jnp.int32)
    other = x[:, 11:].astype(jnp.float32)
    he = jnp.take(params["embedding"], heroes, axis=0).reshape(B, -1)
    h = jnp.concatenate([he, other], axis=1)
    h = jnp.maximum(h @ params["w1"] + params["b1"], 0.0)
    logits = h @ params["w2"] + params["b2"]
    return jax.nn.softmax(logits, axis=1)


def init_params(vocab_size, key):
    k_emb, k_w1, k_b1, k_w2, k_b2 = jax.random.split(key, 5)
    # nn.Embedding init ~ N(0, 1); nn.Linear init ~ U(-1/sqrt(fan_in), +1/sqrt(fan_in))
    emb = jax.random.normal(k_emb, (vocab_size, EMBEDDING_DIM), dtype=jnp.float32)
    lim1 = 1.0 / jnp.sqrt(IN_FEATURES)
    w1 = jax.random.uniform(k_w1, (IN_FEATURES, HIDDEN_DIM), jnp.float32, -lim1, lim1)
    b1 = jax.random.uniform(k_b1, (1, HIDDEN_DIM), jnp.float32, -lim1, lim1)
    lim2 = 1.0 / jnp.sqrt(HIDDEN_DIM)
    w2 = jax.random.uniform(k_w2, (HIDDEN_DIM, NUM_CLASSES), jnp.float32, -lim2, lim2)
    b2 = jax.random.uniform(k_b2, (1, NUM_CLASSES), jnp.float32, -lim2, lim2)
    return {"embedding": emb, "w1": w1, "b1": b1, "w2": w2, "b2": b2}


if __name__ == "__main__":
    vocab_size = 130   # number of hero ids
    batch = 20         # small and not a multiple of 8: exercises ragged last block

    key = jax.random.PRNGKey(0)
    k_params, k_heroes, k_other, k_col0 = jax.random.split(key, 4)
    params = init_params(vocab_size, k_params)

    hero_ids = jax.random.randint(k_heroes, (batch, NUM_HEROES), 0, vocab_size)
    other_feats = jax.random.normal(k_other, (batch, OTHER_FEATURES), dtype=jnp.float32)
    col0 = jax.random.normal(k_col0, (batch, 1), dtype=jnp.float32)
    x = jnp.concatenate(
        [col0, hero_ids.astype(jnp.float32), other_feats], axis=1
    )  # [B, 177]

    ref = dota_nn_reference(x, params)

    # Small explicit tile: multi-step grid + ragged last block.
    out_small = jax.jit(functools.partial(dota_nn_forward, tile_m=8))(x, params)
    # Default tile: capped to ~half the batch so the parallel axis has 2 steps.
    out_default = jax.jit(dota_nn_forward)(x, params)
    jax.block_until_ready((out_small, out_default))

    for out in (out_small, out_default):
        assert out.shape == (batch, NUM_CLASSES)
        # softmax rows sum to 1
        assert bool(jnp.allclose(jnp.sum(out, axis=1), 1.0, atol=1e-5))
        # match the pure-f32 reference within bf16-matmul tolerance
        assert bool(jnp.allclose(out, ref, atol=2e-2, rtol=2e-2))
    print("KERNEL_OK")
</pallas_src>

<mosaic_0001>
module attributes {stable_mosaic.version = 11 : i64} {
  func.func @_dota_mlp_kernel(%arg0: i32, %arg1: memref<8x177xf32, #tpu.memory_space<vmem>>, %arg2: memref<8x160xbf16, #tpu.memory_space<vmem>>, %arg3: memref<177x256xbf16, #tpu.memory_space<vmem>>, %arg4: memref<160x256xbf16, #tpu.memory_space<vmem>>, %arg5: memref<1x256xf32, #tpu.memory_space<vmem>>, %arg6: memref<256x1xbf16, #tpu.memory_space<vmem>>, %arg7: memref<1x1xf32, #tpu.memory_space<vmem>>, %arg8: memref<8x2xf32, #tpu.memory_space<vmem>>) attributes {dimension_semantics = [#tpu.dimension_semantics<parallel>], iteration_bounds = array<i64: 3>, scalar_prefetch = 0 : i64, scratch_operands = 0 : i64, tpu.core_type = #tpu.core_type<tc>, window_params = [{transform_indices = @transform_0, window_bounds = array<i64: 8, 177>}, {transform_indices = @transform_1, window_bounds = array<i64: 8, 160>}, {pipeline_mode = #tpu.pipeline_mode<synchronous>, transform_indices = @transform_2, window_bounds = array<i64: 177, 256>}, {pipeline_mode = #tpu.pipeline_mode<synchronous>, transform_indices = @transform_3, window_bounds = array<i64: 160, 256>}, {pipeline_mode = #tpu.pipeline_mode<synchronous>, transform_indices = @transform_4, window_bounds = array<i64: 1, 256>}, {pipeline_mode = #tpu.pipeline_mode<synchronous>, transform_indices = @transform_5, window_bounds = array<i64: 256, 1>}, {pipeline_mode = #tpu.pipeline_mode<synchronous>, transform_indices = @transform_6, window_bounds = array<i64: 1, 1>}, {transform_indices = @transform_7, window_bounds = array<i64: 8, 2>}]} {
    %c0 = arith.constant 0 : index
    %c0_0 = arith.constant 0 : index
    %0 = vector.load %arg1[%c0, %c0_0] : memref<8x177xf32, #tpu.memory_space<vmem>>, vector<8x177xf32>
    %1 = arith.truncf %0 : vector<8x177xf32> to vector<8x177xbf16>
    %c0_1 = arith.constant 0 : index
    %c0_2 = arith.constant 0 : index
    %2 = vector.load %arg3[%c0_1, %c0_2] : memref<177x256xbf16, #tpu.memory_space<vmem>>, vector<177x256xbf16>
    %cst = arith.constant dense<0.000000e+00> : vector<8x256xf32>
    %3 = tpu.matmul %1, %2, %cst {dimension_numbers = #tpu.dot_dimension_numbers<[1], [0], [0], [1], [0, 0, 1, 1], [], []>} : vector<8x177xbf16>, vector<177x256xbf16>, vector<8x256xf32> -> vector<8x256xf32>
    %c0_3 = arith.constant 0 : index
    %c0_4 = arith.constant 0 : index
    %4 = vector.load %arg2[%c0_3, %c0_4] : memref<8x160xbf16, #tpu.memory_space<vmem>>, vector<8x160xbf16>
    %c0_5 = arith.constant 0 : index
    %c0_6 = arith.constant 0 : index
    %5 = vector.load %arg4[%c0_5, %c0_6] : memref<160x256xbf16, #tpu.memory_space<vmem>>, vector<160x256xbf16>
    %cst_7 = arith.constant dense<0.000000e+00> : vector<8x256xf32>
    %6 = tpu.matmul %4, %5, %cst_7 {dimension_numbers = #tpu.dot_dimension_numbers<[1], [0], [0], [1], [0, 0, 1, 1], [], []>} : vector<8x160xbf16>, vector<160x256xbf16>, vector<8x256xf32> -> vector<8x256xf32>
    %7 = arith.addf %3, %6 : vector<8x256xf32>
    %c0_8 = arith.constant 0 : index
    %c0_9 = arith.constant 0 : index
    %8 = vector.load %arg5[%c0_8, %c0_9] : memref<1x256xf32, #tpu.memory_space<vmem>>, vector<1x256xf32>
    %9 = vector.broadcast %8 : vector<1x256xf32> to vector<8x256xf32>
    %10 = arith.addf %7, %9 : vector<8x256xf32>
    %cst_10 = arith.constant 0.000000e+00 : f32
    %11 = vector.broadcast %cst_10 : f32 to vector<8x256xf32>
    %12 = arith.maximumf %10, %11 : vector<8x256xf32>
    %13 = arith.truncf %12 : vector<8x256xf32> to vector<8x256xbf16>
    %c0_11 = arith.constant 0 : index
    %c0_12 = arith.constant 0 : index
    %14 = vector.load %arg6[%c0_11, %c0_12] : memref<256x1xbf16, #tpu.memory_space<vmem>>, vector<256x1xbf16>
    %cst_13 = arith.constant dense<0.000000e+00> : vector<8x1xf32>
    %15 = tpu.matmul %13, %14, %cst_13 {dimension_numbers = #tpu.dot_dimension_numbers<[1], [0], [0], [1], [0, 0, 1, 1], [], []>} : vector<8x256xbf16>, vector<256x1xbf16>, vector<8x1xf32> -> vector<8x1xf32>
    %c0_14 = arith.constant 0 : index
    %c0_15 = arith.constant 0 : index
    %16 = vector.load %arg7[%c0_14, %c0_15] : memref<1x1xf32, #tpu.memory_space<vmem>>, vector<1x1xf32>
    %17 = vector.broadcast %16 : vector<1x1xf32> to vector<8x1xf32>
    %18 = arith.addf %15, %17 : vector<8x1xf32>
    %cst_16 = arith.constant 0.000000e+00 : f32
    %19 = vector.broadcast %cst_16 : f32 to vector<8x1xf32>
    %20 = arith.subf %19, %18 : vector<8x1xf32>
    %21 = math.exp %20 : vector<8x1xf32>
    %cst_17 = arith.constant 1.000000e+00 : f32
    %22 = vector.broadcast %cst_17 : f32 to vector<8x1xf32>
    %23 = arith.addf %22, %21 : vector<8x1xf32>
    %24 = tpu.reciprocal %23 {approx = true} : vector<8x1xf32> -> vector<8x1xf32>
    %25 = tpu.iota {dimensions = array<i32: 1>} : vector<8x2xi32>
    %c1_i32 = arith.constant 1 : i32
    %26 = vector.broadcast %c1_i32 : i32 to vector<8x2xi32>
    %27 = arith.cmpi eq, %25, %26 : vector<8x2xi32>
    %cst_18 = arith.constant 1.000000e+00 : f32
    %28 = vector.broadcast %cst_18 : f32 to vector<8x1xf32>
    %29 = arith.subf %28, %24 : vector<8x1xf32>
    %30 = vector.shape_cast %24 : vector<8x1xf32> to vector<8x1xf32>
    %31 = vector.broadcast %30 : vector<8x1xf32> to vector<8x2xf32>
    %32 = vector.shape_cast %29 : vector<8x1xf32> to vector<8x1xf32>
    %33 = vector.broadcast %32 : vector<8x1xf32> to vector<8x2xf32>
    %34 = arith.select %27, %31, %33 : vector<8x2xi1>, vector<8x2xf32>
    %c0_19 = arith.constant 0 : index
    %c0_20 = arith.constant 0 : index
    %35 = vector.load %arg8[%c0_19, %c0_20] : memref<8x2xf32, #tpu.memory_space<vmem>>, vector<8x2xf32>
    tpu.vector_store %arg8[%c0_19, %c0_20], %34 {strides = array<i32>} : memref<8x2xf32, #tpu.memory_space<vmem>>, vector<8x2xf32>,
    return
  }
  func.func @transform_0(%arg0: i32) -> (i32, i32) {
    %c0_i32 = arith.constant 0 : i32
    %c0_i32_0 = arith.constant 0 : i32
    return %arg0, %c0_i32 : i32, i32
  }
  func.func @transform_1(%arg0: i32) -> (i32, i32) {
    %c0_i32 = arith.constant 0 : i32
    %c0_i32_0 = arith.constant 0 : i32
    return %arg0, %c0_i32 : i32, i32
  }
  func.func @transform_2(%arg0: i32) -> (i32, i32) {
    %c0_i32 = arith.constant 0 : i32
    %c0_i32_0 = arith.constant 0 : i32
    %c0_i32_1 = arith.constant 0 : i32
    return %c0_i32, %c0_i32_0 : i32, i32
  }
  func.func @transform_3(%arg0: i32) -> (i32, i32) {
    %c0_i32 = arith.constant 0 : i32
    %c0_i32_0 = arith.constant 0 : i32
    %c0_i32_1 = arith.constant 0 : i32
    return %c0_i32, %c0_i32_0 : i32, i32
  }
  func.func @transform_4(%arg0: i32) -> (i32, i32) {
    %c0_i32 = arith.constant 0 : i32
    %c0_i32_0 = arith.constant 0 : i32
    %c0_i32_1 = arith.constant 0 : i32
    return %c0_i32, %c0_i32_0 : i32, i32
  }
  func.func @transform_5(%arg0: i32) -> (i32, i32) {
    %c0_i32 = arith.constant 0 : i32
    %c0_i32_0 = arith.constant 0 : i32
    %c0_i32_1 = arith.constant 0 : i32
    return %c0_i32, %c0_i32_0 : i32, i32
  }
  func.func @transform_6(%arg0: i32) -> (i32, i32) {
    %c0_i32 = arith.constant 0 : i32
    %c0_i32_0 = arith.constant 0 : i32
    %c0_i32_1 = arith.constant 0 : i32
    return %c0_i32, %c0_i32_0 : i32, i32
  }
  func.func @transform_7(%arg0: i32) -> (i32, i32) {
    %c0_i32 = arith.constant 0 : i32
    %c0_i32_0 = arith.constant 0 : i32
    return %arg0, %c0_i32 : i32, i32
  }
}

</mosaic_0001>

<bundles_post_ra>
// kernel: dota_nn_forward.1
= control target key start
LH: loop header
LB: loop body
LE: loop exit
PB: predicated region body
PF: predicated region fallthrough
CT: control target
= control target key end

     0   :  { %s1322_s26 = smov 0   ;;  %s1690_s0 = inlined_call_operand.vmem [shape: f32[20,177], index: 0, kind: input, shape index: {}]   ;;  %s1691_s1 = inlined_call_operand.vmem [shape: bf16[20,160], index: 1, kind: input, shape index: {}]   ;;  %s1692_s2 = inlined_call_operand.vmem [shape: bf16[177,256], index: 2, kind: input, shape index: {}]   ;;  %s1693_s3 = inlined_call_operand.vmem [shape: bf16[160,256], index: 3, kind: input, shape index: {}]   ;;  %s1694_s4 = inlined_call_operand.vmem [shape: f32[1,256], index: 4, kind: input, shape index: {}]   ;;  %s1695_s5 = inlined_call_operand.vmem [shape: bf16[256,1], index: 5, kind: input, shape index: {}]   ;;  %s1696_s6 = inlined_call_operand.<no memory space> [shape: f32[1,1], index: 6, kind: input, shape index: {}]   ;;  %s1697_s7 = inlined_call_operand.vmem [shape: f32[20,2], index: 7, kind: output, shape index: {}]  }
   0x1   :  { %v12_v0 = vstv %s1696_s6 }
   0x2   :  { %13 = vst [vmem:[#allocation2] sm:$0x1] %v12_v0 }
   0x3 LB: > { %s947_s27 = sadd.s32 4294967295, %s1276_s26   ;;  %p951_p0 = scmp.ge.s32.totalorder %s1276_s26, 1  ;;  %s1276_s26 = sphi %s1322_s26, %s19_s26  }
   0x4   : > { %p249_p1 = scmp.lt.s32.totalorder %s1276_s26, 4 }
   0x6   : > { %p250_p2 = pnand %p951_p0, %p249_p1 }
   0x7   : > { %p1383_p3 = scmp.lt.s32.totalorder (!%p250_p2), %s947_s27, 2 }
   0x8   : > { %253 = sbr.rel (%p250_p2) target bundleno = 488 (0x1e8), region = 48 }
   0xd   : > { %v1015_v1 = vld [vmem:[%s1693_s3 + $0x70] sm:$0xf]  ;;  %v1234_v2 = vld [vmem:[%s1693_s3 + $0x74] sm:$0xf0]  ;;  %v1233_v3 = vld [vmem:[%s1693_s3 + $0x74] sm:$0xf] }
   0xe   : > { %v1016_v4 = vor.u32 %v1234_v2, %v1015_v1  ;;  %v1017_v5 = vld [vmem:[%s1693_s3 + $0x78] sm:$0xf0]  ;;  %v1237_v6 = vld [vmem:[%s1693_s3 + $0x94] sm:$0xf]  ;;  %v1007_v10 = vld [vmem:[%s1693_s3 + $0x60] sm:$0xf] }
   0xf   : > { %v1033_v7 = vld [vmem:[%s1693_s3 + $0x98] sm:$0xf0]  ;;  %v1020_v8 = vor.u32 %v1233_v3, %v1017_v5  ;;  %v1232_v11 = vld [vmem:[%s1693_s3 + $0x64] sm:$0xf0]  ;;  %v1231_v12 = vld [vmem:[%s1693_s3 + $0x64] sm:$0xf] }
  0x10   : > { %v1036_v9 = vor.u32 %v1237_v6, %v1033_v7  ;;  %458 = vmatpush.bf16.msra.mxu0 %v1016_v4  ;;  %v1008_v13 = vor.u32 %v1232_v11, %v1007_v10  ;;  %v1009_v14 = vld [vmem:[%s1693_s3 + $0x68] sm:$0xf0]  ;;  %v1235_v15 = vld [vmem:[%s1693_s3 + $0x84] sm:$0xf]  ;;  %v1369_v19 = vld [vmem:[%s1692_s2 + $0xb0] sm:$0x11] }
  0x11   : > { %v1025_v16 = vld [vmem:[%s1693_s3 + $0x88] sm:$0xf0]  ;;  %484 = vmatpush.bf16.msra.mxu2 %v1020_v8  ;;  %v1012_v17 = vor.u32 %v1231_v12, %v1009_v14  ;;  %vm629_vm0 = vcmask 1040384   ;;  %v999_v20 = vld [vmem:[%s1693_s3 + $0x50] sm:$0xf]  ;;  %v577_v21 = vunpack.c.l.b16 %v1369_v19  ;;  %v1278_v24 = vmov 0  }
  0x12   : > { %503 = vmatpush.bf16.msra.mxu3 %v1036_v9  ;;  %v1028_v18 = vor.u32 %v1235_v15, %v1025_v16  ;;  %v1230_v22 = vld [vmem:[%s1693_s3 + $0x54] sm:$0xf0]  ;;  %v1229_v23 = vld [vmem:[%s1693_s3 + $0x54] sm:$0xf]  ;;  %1264 = vset.pattern.permute.xlu0 %v1278_v24  ;;  %v1387_v25 = vsel %vm629_vm0, 65535, %v1278_v24  ;;  %s1700_s27 = smov (!%p1383_p3, %s947_s27), 2 }
  0x13   : > { %v1001_v26 = vld [vmem:[%s1693_s3 + $0x58] sm:$0xf0]  ;;  %v601_v27 = vpack.c.b16 %v577_v21, %v577_v21  ;;  %v1000_v28 = vor.u32 %v1230_v22, %v999_v20  ;;  %v1121_v29 = vld [vmem:[%s1692_s2 + $0xa0] sm:$0xf]  ;;  %v1218_v30 = vld [vmem:[%s1692_s2 + $0xa4] sm:$0xf0] }
  0x14   : > { %459 = vmatpush.bf16.msra.mxu0 %v1008_v13  ;;  %v991_v31 = vld [vmem:[%s1693_s3 + $0x40] sm:$0xf]  ;;  %v1004_v32 = vor.u32 %v1229_v23, %v1001_v26  ;;  %v1228_v33 = vld [vmem:[%s1693_s3 + $0x44] sm:$0xf0]  ;;  %v1227_v34 = vld [vmem:[%s1693_s3 + $0x44] sm:$0xf]  ;;  %v1122_v41 = vor.u32 %v1218_v30, %v1121_v29 }
  0x15   : > { %485 = vmatpush.bf16.msra.mxu2 %v1012_v17  ;;  %v993_v35 = vld [vmem:[%s1693_s3 + $0x48] sm:$0xf0]  ;;  %v633_v36 = vand.u32 %v1387_v25, %v601_v27  ;;  %v1097_v37 = vld [vmem:[%s1692_s2 + $0x70] sm:$0xf]  ;;  %v1212_v38 = vld [vmem:[%s1692_s2 + $0x74] sm:$0xf0]  ;;  %v992_v42 = vor.u32 %v1228_v33, %v991_v31  ;;  %v578_v33 = vunpack.c.h.b16 %v1369_v19 }
  0x16   : > { %504 = vmatpush.bf16.msra.mxu3 %v1028_v18  ;;  %v1113_v39 = vld [vmem:[%s1692_s2 + $0x90] sm:$0xf]  ;;  %v1098_v40 = vor.u32 %v1212_v38, %v1097_v37  ;;  %v1216_v43 = vld [vmem:[%s1692_s2 + $0x94] sm:$0xf0]  ;;  %s1196_s16 = sshll.u32 %s1700_s27, 3  ;;  %v996_v45 = vor.u32 %v1227_v34, %v993_v35  ;;  %vm454_vm1 = vcmask 261120  }
  0x17   : > { %v983_v44 = vld [vmem:[%s1693_s3 + $0x30] sm:$0xf]  ;;  %s294_s20 = scalar_lea.vmem %s1691_s1, %s1196_s16  ;;  %v1226_v46 = vld [vmem:[%s1693_s3 + $0x34] sm:$0xf0]  ;;  %v1225_v47 = vld [vmem:[%s1693_s3 + $0x34] sm:$0xf]  ;;  %v1114_v55 = vor.u32 %v1216_v43, %v1113_v39  ;;  %s298_s30 = scalar_lea.vmem %s1697_s7, %s1196_s16 }
  0x18   : > { %460 = vmatpush.bf16.msra.mxu0 %v1000_v28  ;;  %638 = vmatpush.bf16.msra.mxu1 %v1098_v40  ;;  %v1089_v48 = vld [vmem:[%s1692_s2 + $0x60] sm:$0xf]  ;;  %v985_v50 = vld [vmem:[%s1693_s3 + $0x38] sm:$0xf0]  ;;  %v1210_v51 = vld [vmem:[%s1692_s2 + $0x64] sm:$0xf0]  ;;  %v984_v56 = vor.u32 %v1226_v46, %v983_v44  ;;  %v602_v46 = vpack.c.b16 %v578_v33, %v578_v33 }
  0x19   : > { %486 = vmatpush.bf16.msra.mxu2 %v1004_v32  ;;  %v1447_v49 = vld [vmem:[%s294_s20] sm:$0xff]  ;;  %v1090_v54 = vor.u32 %v1210_v51, %v1089_v48  ;;  %v1214_v57 = vld [vmem:[%s1692_s2 + $0x84] sm:$0xf0]  ;;  %v1211_v58 = vld [vmem:[%s1692_s2 + $0x74] sm:$0xf]  ;;  %v988_v61 = vor.u32 %v1225_v47, %v985_v50  ;;  %s1195_s12 = sshll.u32 %s1700_s27, 4 }
  0x1a   : > { %655 = vmatpush.bf16.msrb.mxu3 %v633_v36  ;;  %v350_v52 = vunpack.c.h.b16 %v1447_v49  ;;  %v1105_v53 = vld [vmem:[%s1692_s2 + $0x80] sm:$0xf]  ;;  %v1081_v59 = vld [vmem:[%s1692_s2 + $0x50] sm:$0xf]  ;;  %v1224_v63 = vld [vmem:[%s1693_s3 + $0x24] sm:$0xf0]  ;;  %s1536_s20 = scalar_lea.vmem %s1690_s0, %s1195_s12  ;;  %v349_v34 = vunpack.c.l.b16 %v1447_v49 }
  0x1b   : > { %v975_v62 = vld [vmem:[%s1693_s3 + $0x20] sm:$0xf]  ;;  %v1208_v0 = vld [vmem:[%s1692_s2 + $0x54] sm:$0xf0]  ;;  %v1099_v1 = vld [vmem:[%s1692_s2 + $0x78] sm:$0xf0]  ;;  %v1106_v7 = vor.u32 %v1214_v57, %v1105_v53  ;;  %v636_v57 = vand.u32 %v1387_v25, %v602_v46 }
  0x1c   : > { %461 = vmatpush.bf16.msra.mxu0 %v992_v42  ;;  %v1468_v60 = vpack.c.b16 %v350_v52, %v350_v52  ;;  %639 = vmatpush.bf16.msra.mxu1 %v1090_v54  ;;  %v1223_v2 = vld [vmem:[%s1693_s3 + $0x24] sm:$0xf]  ;;  %v977_v3 = vld [vmem:[%s1693_s3 + $0x28] sm:$0xf0]  ;;  %v1082_v4 = vor.u32 %v1208_v0, %v1081_v59  ;;  %v1073_v5 = vld [vmem:[%s1692_s2 + $0x40] sm:$0xf]  ;;  %v976_v8 = vor.u32 %v1224_v63, %v975_v62 }
  0x1d   : > { %487 = vmatpush.bf16.msra.mxu2 %v996_v45  ;;  %v1206_v6 = vld [vmem:[%s1692_s2 + $0x44] sm:$0xf0]  ;;  %v1102_v9 = vor.u32 %v1211_v58, %v1099_v1  ;;  %v980_v10 = vor.u32 %v1223_v2, %v977_v3  ;;  %v1209_v11 = vld [vmem:[%s1692_s2 + $0x64] sm:$0xf]  ;;  %v967_v12 = vld [vmem:[%s1693_s3 + $0x10] sm:$0xf]  ;;  %v351_v47 = vpack.c.b16 %v349_v34, %v349_v34 }
  0x1e   : > { %656 = vmatpush.bf16.msrb.mxu3 %v1122_v41  ;;  %v1222_v13 = vld [vmem:[%s1693_s3 + $0x14] sm:$0xf0]  ;;  %v1091_v14 = vld [vmem:[%s1692_s2 + $0x68] sm:$0xf0]  ;;  %v1221_v15 = vld [vmem:[%s1693_s3 + $0x14] sm:$0xf]  ;;  %v1074_v17 = vor.u32 %v1206_v6, %v1073_v5 }
  0x1f   : > { %1038 = vmatmul.msk.bf16.vlgmr.msra.gmra.mxu3 %vm454_vm1, %v1468_v60  ;;  %v969_v16 = vld [vmem:[%s1693_s3 + $0x18] sm:$0xf0]  ;;  %v1065_v18 = vld [vmem:[%s1692_s2 + $0x30] sm:$0xf]  ;;  %v1204_v20 = vld [vmem:[%s1692_s2 + $0x34] sm:$0xf0]  ;;  %v968_v21 = vor.u32 %v1222_v13, %v967_v12  ;;  %v1094_v23 = vor.u32 %v1209_v11, %v1091_v14 }
  0x20   : > { %462 = vmatpush.bf16.msra.mxu0 %v984_v56  ;;  %640 = vmatpush.bf16.msra.mxu1 %v1082_v4  ;;  %v1207_v22 = vld [vmem:[%s1692_s2 + $0x54] sm:$0xf]  ;;  %v972_v24 = vor.u32 %v1221_v15, %v969_v16  ;;  %v1083_v26 = vld [vmem:[%s1692_s2 + $0x58] sm:$0xf0]  ;;  %v959_v27 = vld [vmem:[%s1693_s3] sm:$0xf]  ;;  %v1066_v31 = vor.u32 %v1204_v20, %v1065_v18 }
  0x21   : > { %488 = vmatpush.bf16.msra.mxu2 %v988_v61  ;;  %v1220_v28 = vld [vmem:[%s1693_s3 + $0x4] sm:$0xf0]  ;;  %v1219_v29 = vld [vmem:[%s1693_s3 + $0x4] sm:$0xf]  ;;  %v961_v30 = vld [vmem:[%s1693_s3 + $0x8] sm:$0xf0]  ;;  %v1086_v19 = vor.u32 %v1207_v22, %v1083_v26 }
  0x22   : > { %657 = vmatpush.bf16.msrb.mxu3 %v1114_v55  ;;  %v1031_v32 = vld [vmem:[%s1693_s3 + $0x90] sm:$0xf]  ;;  %v1238_v35 = vld [vmem:[%s1693_s3 + $0x94] sm:$0xf0]  ;;  %v1057_v36 = vld [vmem:[%s1692_s2 + $0x20] sm:$0xf]  ;;  %v960_v38 = vor.u32 %v1220_v28, %v959_v27  ;;  %v964_v40 = vor.u32 %v1219_v29, %v961_v30 }
  0x23   : > { %v1202_v37 = vld [vmem:[%s1692_s2 + $0x24] sm:$0xf0]  ;;  %v1205_v41 = vld [vmem:[%s1692_s2 + $0x44] sm:$0xf]  ;;  %v1075_v42 = vld [vmem:[%s1692_s2 + $0x48] sm:$0xf0]  ;;  %v1032_v43 = vor.u32 %v1238_v35, %v1031_v32 }
  0x24   : > { %463 = vmatpush.bf16.msra.mxu0 %v976_v8  ;;  %641 = vmatpush.bf16.msra.mxu1 %v1074_v17  ;;  %v301_v39 = vld [vmem:[%s1536_s20 + $0x8] sm:$0xff]  ;;  %v1058_v44 = vor.u32 %v1202_v37, %v1057_v36  ;;  %v1049_v45 = vld [vmem:[%s1692_s2 + $0x10] sm:$0xf]  ;;  %v1200_v49 = vld [vmem:[%s1692_s2 + $0x14] sm:$0xf0]  ;;  %vm625_vm2 = vcmask 400384   ;;  %v1078_v52 = vor.u32 %v1205_v41, %v1075_v42 }
  0x25   : > { %489 = vmatpush.bf16.msra.mxu2 %v980_v10  ;;  %v303_v48 = vpack.c.bf16 %v301_v39, %v301_v39  ;;  %v1023_v50 = vld [vmem:[%s1693_s3 + $0x80] sm:$0xf]  ;;  %v1236_v51 = vld [vmem:[%s1693_s3 + $0x84] sm:$0xf0]  ;;  %v1203_v53 = vld [vmem:[%s1692_s2 + $0x34] sm:$0xf]  ;;  %v1050_v55 = vor.u32 %v1200_v49, %v1049_v45 }
  0x26   : > { %658 = vmatpush.bf16.msrb.mxu3 %v1106_v7  ;;  %v1067_v54 = vld [vmem:[%s1692_s2 + $0x38] sm:$0xf0]  ;;  %v1024_v56 = vor.u32 %v1236_v51, %v1023_v50  ;;  %v1041_v58 = vld [vmem:[%s1692_s2] sm:$0xf]  ;;  %v1198_v59 = vld [vmem:[%s1692_s2 + $0x4] sm:$0xf0] }
  0x27   : > { %v1217_v61 = vld [vmem:[%s1692_s2 + $0xa4] sm:$0xf]  ;;  %v1123_v25 = vld [vmem:[%s1692_s2 + $0xa8] sm:$0xf0]  ;;  %v1070_v62 = vor.u32 %v1203_v53, %v1067_v54  ;;  %v1042_v1 = vor.u32 %v1198_v59, %v1041_v58  ;;  %v1215_v4 = vld [vmem:[%s1692_s2 + $0x94] sm:$0xf] }
  0x28   : > { %464 = vmatpush.bf16.msra.mxu0 %v968_v21  ;;  %642 = vmatpush.bf16.msra.mxu1 %v1066_v31  ;;  %v1201_v63 = vld [vmem:[%s1692_s2 + $0x24] sm:$0xf]  ;;  %v1059_v0 = vld [vmem:[%s1692_s2 + $0x28] sm:$0xf0]  ;;  %v1126_v3 = vor.u32 %v1217_v61, %v1123_v25  ;;  %v1115_v5 = vld [vmem:[%s1692_s2 + $0x98] sm:$0xf0] }
  0x29   : > { %490 = vmatpush.bf16.msra.mxu2 %v972_v24  ;;  %v300_v2 = vld [vmem:[%s1536_s20] sm:$0xff]  ;;  %v1062_v6 = vor.u32 %v1201_v63, %v1059_v0  ;;  %v1199_v8 = vld [vmem:[%s1692_s2 + $0x14] sm:$0xf]  ;;  %v1118_v10 = vor.u32 %v1215_v4, %v1115_v5  ;;  %v1107_v13 = vld [vmem:[%s1692_s2 + $0x88] sm:$0xf0]  ;;  %vm880_vm4 = vcmask 15360  }
  0x2a   : > { %664 = vmatpush.bf16.msra.mxu3 %v1102_v9  ;;  %v302_v7 = vpack.c.bf16 %v300_v2, %v300_v2  ;;  %v1051_v9 = vld [vmem:[%s1692_s2 + $0x18] sm:$0xf0]  ;;  %v1213_v12 = vld [vmem:[%s1692_s2 + $0x84] sm:$0xf]  ;;  %v1043_v15 = vld [vmem:[%s1692_s2 + $0x8] sm:$0xf0] }
  0x2b   : > { %v1054_v11 = vor.u32 %v1199_v8, %v1051_v9  ;;  %v1197_v14 = vld [vmem:[%s1692_s2 + $0x4] sm:$0xf]  ;;  %v1110_v16 = vor.u32 %v1213_v12, %v1107_v13  ;;  %v1246_v18 = vld [vmem:[%s1695_s5 + $0x38] sm:$0xff]  ;;  %v1245_v20 = vld [vmem:[%s1695_s5 + $0x30] sm:$0xff] }
  0x2c   : > { %465 = vmatpush.bf16.msra.mxu0 %v960_v38  ;;  %643 = vmatpush.bf16.msra.mxu1 %v1058_v44  ;;  %v1046_v17 = vor.u32 %v1197_v14, %v1043_v15  ;;  %v1244_v21 = vld [vmem:[%s1695_s5 + $0x28] sm:$0xff]  ;;  %v1243_v22 = vld [vmem:[%s1695_s5 + $0x20] sm:$0xff]  ;;  %v1253_v24 = vld [vmem:[%s1695_s5 + $0x70] sm:$0xff]  ;;  %v865_v14 = vlaneseq }
  0x2d   : > { %491 = vmatpush.bf16.msra.mxu2 %v964_v40  ;;  %v1241_v26 = vld [vmem:[%s1695_s5 + $0x10] sm:$0xff]  ;;  %v1252_v27 = vld [vmem:[%s1695_s5 + $0x68] sm:$0xff]  ;;  %v1251_v29 = vld [vmem:[%s1695_s5 + $0x60] sm:$0xff] }
  0x2e   : > { %665 = vmatpush.bf16.msra.mxu3 %v1094_v23  ;;  %v1242_v23 = vld [vmem:[%s1695_s5 + $0x18] sm:$0xff]  ;;  %v1240_v28 = vld [vmem:[%s1695_s5 + $0x8] sm:$0xff]  ;;  %v1239_v31 = vld [vmem:[%s1695_s5] sm:$0xff] }
  0x2f   : > { %466 = vmatmul.bf16.vlgmr.msra.gmra.mxu0 %v351_v47  ;;  %1127 = vmatmul.msk.bf16.vlgmr.msrb.gmra.mxu3 %vm625_vm2, %v303_v48  ;;  %v1250_v32 = vld [vmem:[%s1695_s5 + $0x58] sm:$0xff]  ;;  %v1249_v33 = vld [vmem:[%s1695_s5 + $0x50] sm:$0xff]  ;;  %v1248_v36 = vld [vmem:[%s1695_s5 + $0x48] sm:$0xff] }
  0x30   : > { %477 = vmatpush.bf16.msrb.mxu0 %v1032_v43  ;;  %492 = vmatmul.bf16.vlgmr.msra.gmra.mxu2 %v351_v47  ;;  %v1247_v39 = vld [vmem:[%s1695_s5 + $0x40] sm:$0xff] }
  0x31   : > { %644 = vmatpush.bf16.msra.mxu1 %v1050_v55  ;;  %834 = vmatpush.bf16.msrb.mxu2 %v1246_v18  ;;  %v690_v44 = vld [vmem:[%s1694_s4] sm:$0x3] }
  0x32   : > { %666 = vmatpush.bf16.msra.mxu3 %v1086_v19  ;;  %v1265_v2 = vld [vmem:[#allocation2] ss:$0 sm:$0xff] }
  0x34   : > { %478 = vmatpush.bf16.msrb.mxu0 %v1024_v56 }
  0x35   : > { %645 = vmatpush.bf16.msra.mxu1 %v1042_v1  ;;  %835 = vmatpush.bf16.msrb.mxu2 %v1245_v20 }
  0x36   : > { %667 = vmatpush.bf16.msra.mxu3 %v1078_v52 }
  0x38   : > { %681 = vmatpush.bf16.msra.mxu0 %v636_v57  ;;  %646 = vmatmul.bf16.vlgmr.msra.gmra.mxu1 %v302_v7  ;;  %v693_v57 = vperm.slane %v690_v44, 1 }
  0x39   : > { %836 = vmatpush.bf16.msrb.mxu2 %v1244_v21 }
  0x3a   : > { %668 = vmatpush.bf16.msra.mxu3 %v1070_v62 }
  0x3c   : > { %682 = vmatpush.bf16.msra.mxu0 %v1126_v3 }
  0x3d   : > { %837 = vmatpush.bf16.msrb.mxu2 %v1243_v22 }
  0x3e   : > { %669 = vmatpush.bf16.msra.mxu3 %v1062_v6 }
  0x3f   : > { %1037 = vmatmul.msk.bf16.vlgmr.msrb.gmra.mxu0 %vm454_vm1, %v1468_v60  ;;  %v1254_v60 = vld [vmem:[%s1695_s5 + $0x78] sm:$0xff] }
  0x40   : > { %683 = vmatpush.bf16.msra.mxu0 %v1118_v10  ;;  %847 = vmatpush.bf16.msrb.mxu1 %v1254_v60 }
  0x41   : > { %838 = vmatpush.bf16.msrb.mxu2 %v1242_v23 }
  0x42   : > { %670 = vmatpush.bf16.msra.mxu3 %v1054_v11 }
  0x44   : > { %684 = vmatpush.bf16.msra.mxu0 %v1110_v16  ;;  %848 = vmatpush.bf16.msrb.mxu1 %v1253_v24  ;;  %v866_v16 = vand.u32 127, %v865_v14 }
  0x45   : > { %839 = vmatpush.bf16.msrb.mxu2 %v1241_v26 }
  0x46   : > { %671 = vmatpush.bf16.msra.mxu3 %v1046_v17  ;;  %vm867_vm3 = vcmp.eq.s32.totalorder %v866_v16, 1 }
  0x48   : > { %849 = vmatpush.bf16.msrb.mxu1 %v1252_v27 }
  0x49   : > { %672 = vmatmul.bf16.vlgmr.msra.gmra.mxu3 %v302_v7  ;;  %840 = vmatpush.bf16.msrb.mxu2 %v1240_v28 }
  0x4c   : > { %850 = vmatpush.bf16.msrb.mxu1 %v1251_v29 }
  0x4d   : > { %841 = vmatpush.bf16.msrb.mxu2 %v1239_v31 }
  0x4f   : > { %1128 = vmatmul.msk.bf16.vlgmr.msra.gmra.mxu0 %vm625_vm2, %v303_v48  ;;  %v692_v48 = vperm.slane %v690_v44, 0 }
  0x50   : > { %851 = vmatpush.bf16.msrb.mxu1 %v1250_v32 }
  0x54   : > { %852 = vmatpush.bf16.msrb.mxu1 %v1249_v33 }
  0x58   : > { %853 = vmatpush.bf16.msrb.mxu1 %v1248_v36 }
  0x5c   : > { %854 = vmatpush.bf16.msrb.mxu1 %v1247_v39 }
  0xa2   : > { %v506_v30 = vpop.f32.mrf.mxu3 }
  0xaa   : > { %v508_v34 = vpop.f32.mrf.mxu3 }
  0xac   : > { %v467_v35 = vpop.f32.mrf.mxu0 }
  0xb2   : > { %v660_v37 = vpop.f32.mrf.mxu3 }
  0xb3   : > { %v493_v38 = vpop.f32.mrf.mxu2 }
  0xb4   : > { %v469_v19 = vpop.f32.mrf.mxu0  ;;  %v507_v55 = vadd.f32 %v506_v30, %v493_v38 }
  0xb5   : > { %v647_v40 = vpop.f32.mrf.mxu1 }
  0xba   : > { %v662_v41 = vpop.f32.mrf.mxu3 }
  0xbb   : > { %v495_v42 = vpop.f32.mrf.mxu2 }
  0xbc   : > { %v480_v43 = vpop.f32.mrf.mxu0 }
  0xbd   : > { %v481_v45 = vadd.f32 %v480_v43, %v467_v35  ;;  %v649_v46 = vpop.f32.mrf.mxu1 }
  0xbf   : > { %v648_v47 = vadd.f32 %v647_v40, %v481_v45 }
  0xc1   : > { %v661_v49 = vadd.f32 %v660_v37, %v648_v47 }
  0xc3   : > { %v696_v50 = vadd.f32 %v692_v48, %v661_v49 }
  0xc4   : > { %v482_v51 = vpop.f32.mrf.mxu0 }
  0xc5   : > { %v698_v52 = vmax.f32 %v696_v50, 0.0 }
  0xc7   : > { %v700_v54 = vpack.c.bf16 %v698_v52, %v698_v52 }
  0xc9   : > { %842 = vmatmul.bf16.vlgmr.msrb.gmra.mxu2 %v700_v54 }
  0xcc   : > { %v673_v53 = vpop.f32.mrf.mxu3  ;;  %v686_v58 = vpop.f32.mrf.mxu0 }
  0xcd   : > { %v674_v56 = vadd.f32 %v673_v53, %v507_v55 }
  0xcf   : > { %v687_v59 = vadd.f32 %v686_v58, %v674_v56 }
  0xd1   : > { %v697_v25 = vadd.f32 %v693_v57, %v687_v59 }
  0xd3   : > { %v699_v62 = vmax.f32 %v697_v25, 0.0 }
  0xd4   : > { %v675_v61 = vpop.f32.mrf.mxu3  ;;  %v688_v0 = vpop.f32.mrf.mxu0 }
  0xd5   : > { %v701_v63 = vpack.c.bf16 %v699_v62, %v699_v62 }
  0xd7   : > { %855 = vmatmul.bf16.vlgmr.msrb.gmra.mxu1 %v701_v63 }
 0x14c   : > { %v843_v1 = vpop.f32.mrf.mxu2 }
 0x14d   : > { %v844_v3 = vadd.f32 %v1265_v2, %v843_v1 }
 0x154   : > { %v856_v4 = vpop.f32.mrf.mxu1  ;;  %v845_v6 = vpop.f32.mrf.mxu2 }
 0x155   : > { %v857_v5 = vadd.f32 %v856_v4, %v844_v3 }
 0x157   : > { %v860_v7 = vsub.f32 0.0, %v857_v5 }
 0x159   : > { %v861_v8 = vmul.f32 1.442695, %v860_v7 }
 0x15b   : > { %1266 = vpow2.f32 %v861_v8 }
 0x15c   : > { %v858_v9 = vpop.f32.mrf.mxu1 }
 0x161   : > { %v1267_v10 = vpop.eup %1266 }
 0x162   : > { %v863_v11 = vadd.f32 1.0, %v1267_v10 }
 0x164   : > { %1268 = vrcp.f32 %v863_v11 }
 0x16a   : > { %v1269_v12 = vpop.eup %1268 }
 0x16b   : > { %871 = vperm.xlu0 %1264, %v1269_v12   ;;  %v868_v13 = vsub.f32 1.0, %v1269_v12 }
 0x173   : > { %876 = vperm.xlu0 %1264, %v868_v13  }
 0x1dd   : > { %v872_v15 = vpop.permute.xlu0 %871 }
 0x1e5   : > { %v877_v17 = vpop.permute.xlu0 %876 }
 0x1e6   : > { %v879_v18 = vsel %vm867_vm3, %v872_v15, %v877_v17 }
 0x1e7   : > { %881 = vst.msk [vmem:[%s298_s30] sm:$0xff] %vm880_vm4, %v879_v18 }
 0x1e8 PF: > { %s19_s26 = sadd.s32 1, %s1276_s26  }
 0x1e9   : > { %p16_p4 = scmp.ge.s32.totalorder %s19_s26, 5  }
 0x1eb   :  { %18 = sbr.rel (!%p16_p4) target bundleno = 3 (0x3), region = 81 }

</bundles_post_ra>
